<compile_context>
chip_gen: v5e
topology: v5e:2x2
jax: 0.10.0
libtpu: 0.0.40
codegen_flags: <defaults>
</compile_context>

<pallas_src>
import jax
import jax.numpy as jnp
from jax.experimental import pallas as pl
from jax.experimental.pallas import tpu as pltpu


def _satt_kernel(w_ref, b_ref, x_ref, o_ref):
    # w_ref: (C, 1)    f32 VMEM  -- 1x1 conv weights (single output channel)
    # b_ref: (1,)      f32 SMEM  -- conv bias
    # x_ref: (Nb, C, T) VMEM     -- block of the native (N, C, H*W) activations
    # o_ref: (Nb, 1, T) VMEM     -- lane-dense output block
    x = x_ref[...].astype(jnp.float32)          # one full-tile upcast
    w = w_ref[...]                              # (C, 1)

    # 1x1 conv -> one output channel: full-density VPU multiply, then a
    # cross-sublane (XLU) reduce over the channel axis.  (Nb, 1, T)
    s = jnp.sum(x * w[None, :, :], axis=1, keepdims=True) + b_ref[0]

    # nn.Softmax(dim=1) over the size-1 channel axis: exp(s - max)/sum collapses
    # to 1 for finite logits and NaN for +/-inf or NaN -> one compare+select.
    o_ref[...] = jnp.where(
        jnp.isfinite(s), jnp.float32(1.0), jnp.float32(jnp.nan)
    ).astype(o_ref.dtype)


def _largest_divisor_leq(n, cap):
    cap = max(1, min(n, cap))
    for d in range(cap, 0, -1):
        if n % d == 0:
            return d
    return 1


def satt_module(x_nchw, conv_w, conv_b, *, vmem_block_budget_bytes=4 * 1024 * 1024):
    """SAttModule forward.  x_nchw: (N, C, H, W); conv_w: (1, C, 1, 1); conv_b: (1,)."""
    N, C, H, W = x_nchw.shape
    HW = H * W
    itemsize = jnp.dtype(x_nchw.dtype).itemsize

    x3 = x_nchw.reshape(N, C, HW)                   # free reshape, keeps NCHW layout
    w = conv_w.reshape(C, 1).astype(jnp.float32)    # (C, 1) -> VMEM (broadcast in-kernel)
    b = conv_b.reshape(1).astype(jnp.float32)       # (1,)   -> SMEM scalar

    # ---- Tile sizing from a per-copy VMEM budget (Pallas double-buffers blocks). ----
    sub = (4 // itemsize) * 8                       # sublane packing for this dtype
    c_pad = -(-C // sub) * sub                      # padded channel rows in VMEM
    bytes_per_pixel = (c_pad + sub) * itemsize      # padded input + padded output row
    max_pixels = max(128, vmem_block_budget_bytes // bytes_per_pixel)

    if HW <= max_pixels:
        # Small feature maps: take the whole (C, H*W) plane per image and batch
        # images per grid step so each step moves a sizeable block.
        t = HW
        nb = _largest_divisor_leq(N, max_pixels // max(HW, 1))
    else:
        # Large feature maps: lane-dense pixel tiles (multiple of 128), 1 image/step.
        t = max(128, (max_pixels // 128) * 128)
        nb = 1

    grid = (N // nb, pl.cdiv(HW, t))

    out = pl.pallas_call(
        _satt_kernel,
        out_shape=jax.ShapeDtypeStruct((N, 1, HW), x_nchw.dtype),
        grid=grid,
        in_specs=[
            pl.BlockSpec(memory_space=pltpu.MemorySpace.VMEM),      # w (tiny, whole array)
            pl.BlockSpec(memory_space=pltpu.MemorySpace.SMEM),      # b (scalar)
            pl.BlockSpec((nb, C, t), lambda n, j: (n, 0, j)),       # x block
        ],
        out_specs=pl.BlockSpec((nb, 1, t), lambda n, j: (n, 0, j)),
        compiler_params=pltpu.CompilerParams(
            dimension_semantics=("parallel", "parallel"),
            vmem_limit_bytes=32 * 1024 * 1024,
        ),
        cost_estimate=pl.CostEstimate(
            flops=2 * N * C * HW,
            transcendentals=0,
            bytes_accessed=N * C * HW * itemsize + N * HW * itemsize,
        ),
    )(w, b, x3)

    return out.reshape(N, 1, H, W)


if __name__ == "__main__":
    key = jax.random.PRNGKey(0)
    k_x, k_w, k_b = jax.random.split(key, 3)

    N, C, H, W = 2, 4, 16, 16
    x = jax.random.normal(k_x, (N, C, H, W), dtype=jnp.float32)

    # Conv2d(in_planes=C, out_planes=1, kernel_size=1, bias=True)-style init.
    bound = 1.0 / (C ** 0.5)
    conv_w = jax.random.uniform(k_w, (1, C, 1, 1), jnp.float32, -bound, bound)
    conv_b = jax.random.uniform(k_b, (1,), jnp.float32, -bound, bound)

    y = satt_module(x, conv_w, conv_b)
    jax.block_until_ready(y)

    # Plain-JAX reference: 1x1 conv + softmax over the singleton channel dim.
    ref_conv = jnp.einsum("nchw,oc->nohw", x, conv_w.reshape(1, C)) + conv_b.reshape(1, 1, 1, 1)
    ref = jax.nn.softmax(ref_conv, axis=1)

    assert y.shape == (N, 1, H, W)
    assert jnp.allclose(y, ref, atol=1e-5), "mismatch vs reference"

    print("KERNEL_OK")
</pallas_src>

<mosaic_0001>
module attributes {stable_mosaic.version = 11 : i64} {
  func.func @_satt_kernel(%arg0: i32, %arg1: i32, %arg2: memref<4x1xf32, #tpu.memory_space<vmem>>, %arg3: memref<1xf32, #tpu.memory_space<smem>>, %arg4: memref<2x4x256xf32, #tpu.memory_space<vmem>>, %arg5: memref<2x1x256xf32, #tpu.memory_space<vmem>>) attributes {dimension_semantics = [#tpu.dimension_semantics<parallel>, #tpu.dimension_semantics<parallel>], iteration_bounds = array<i64: 1, 1>, scalar_prefetch = 0 : i64, scratch_operands = 0 : i64, tpu.core_type = #tpu.core_type<tc>, window_params = [{pipeline_mode = #tpu.pipeline_mode<synchronous>, transform_indices = @transform_0, window_bounds = array<i64: 4, 1>}, {transform_indices = @transform_1, window_bounds = array<i64: 1>}, {transform_indices = @transform_2, window_bounds = array<i64: 2, 4, 256>}, {transform_indices = @transform_3, window_bounds = array<i64: 2, 1, 256>}]} {
    %c0 = arith.constant 0 : index
    %c0_0 = arith.constant 0 : index
    %c0_1 = arith.constant 0 : index
    %0 = vector.load %arg4[%c0, %c0_0, %c0_1] : memref<2x4x256xf32, #tpu.memory_space<vmem>>, vector<2x4x256xf32>
    %c0_2 = arith.constant 0 : index
    %c0_3 = arith.constant 0 : index
    %1 = vector.load %arg2[%c0_2, %c0_3] : memref<4x1xf32, #tpu.memory_space<vmem>>, vector<4x1xf32>
    %2 = vector.shape_cast %1 : vector<4x1xf32> to vector<1x4x1xf32>
    %3 = vector.broadcast %2 : vector<1x4x1xf32> to vector<2x4x256xf32>
    %4 = arith.mulf %0, %3 : vector<2x4x256xf32>
    %cst = arith.constant dense<0.000000e+00> : vector<2x256xf32>
    %5 = vector.multi_reduction <add>, %4, %cst [1] : vector<2x4x256xf32> to vector<2x256xf32>
    %6 = vector.shape_cast %5 : vector<2x256xf32> to vector<2x1x256xf32>
    %c0_4 = arith.constant 0 : index
    %7 = memref.load %arg3[%c0_4] : memref<1xf32, #tpu.memory_space<smem>>
    %8 = vector.broadcast %7 : f32 to vector<2x1x256xf32>
    %9 = arith.addf %6, %8 : vector<2x1x256xf32>
    %10 = tpu.weird %9 : vector<2x1x256xf32> -> vector<2x1x256xi1>
    %cst_5 = arith.constant dense<true> : vector<2x1x256xi1>
    %11 = arith.xori %10, %cst_5 : vector<2x1x256xi1>
    %cst_6 = arith.constant 1.000000e+00 : f32
    %cst_7 = arith.constant 0x7FC00000 : f32
    %12 = vector.broadcast %cst_6 : f32 to vector<2x1x256xf32>
    %13 = vector.broadcast %cst_7 : f32 to vector<2x1x256xf32>
    %14 = arith.select %11, %12, %13 : vector<2x1x256xi1>, vector<2x1x256xf32>
    %c0_8 = arith.constant 0 : index
    %c0_9 = arith.constant 0 : index
    %c0_10 = arith.constant 0 : index
    %15 = vector.load %arg5[%c0_8, %c0_9, %c0_10] : memref<2x1x256xf32, #tpu.memory_space<vmem>>, vector<2x1x256xf32>
    tpu.vector_store %arg5[%c0_8, %c0_9, %c0_10], %14 {strides = array<i32>} : memref<2x1x256xf32, #tpu.memory_space<vmem>>, vector<2x1x256xf32>,
    return
  }
  func.func @transform_0(%arg0: i32, %arg1: i32) -> (i32, i32) {
    %c0_i32 = arith.constant 0 : i32
    %c0_i32_0 = arith.constant 0 : i32
    %c0_i32_1 = arith.constant 0 : i32
    return %c0_i32, %c0_i32_0 : i32, i32
  }
  func.func @transform_1(%arg0: i32, %arg1: i32) -> i32 {
    %c0_i32 = arith.constant 0 : i32
    %c0_i32_0 = arith.constant 0 : i32
    return %c0_i32 : i32
  }
  func.func @transform_2(%arg0: i32, %arg1: i32) -> (i32, i32, i32) {
    %c0_i32 = arith.constant 0 : i32
    %c0_i32_0 = arith.constant 0 : i32
    return %arg0, %c0_i32, %arg1 : i32, i32, i32
  }
  func.func @transform_3(%arg0: i32, %arg1: i32) -> (i32, i32, i32) {
    %c0_i32 = arith.constant 0 : i32
    %c0_i32_0 = arith.constant 0 : i32
    return %arg0, %c0_i32, %arg1 : i32, i32, i32
  }
}

</mosaic_0001>

<bundles_post_ra>
// kernel: tpu_custom_call.1
= control target key start
LH: loop header
LB: loop body
LE: loop exit
PB: predicated region body
PF: predicated region fallthrough
CT: control target
= control target key end

     0   :  { %9 = vsyncpa [#allocation4], 0  ;;  %s253_s0 = inlined_call_operand.vmem [shape: f32[4,1], index: 0, kind: input, shape index: {}]   ;;  %s254_s1 = inlined_call_operand.<no memory space> [shape: f32[1], index: 1, kind: input, shape index: {}]   ;;  %s255_s2 = inlined_call_operand.hbm [shape: f32[2,4,256], index: 2, kind: input, shape index: {}]   ;;  %s256_s3 = inlined_call_operand.hbm [shape: f32[2,1,256], index: 3, kind: output, shape index: {}]  }
   0x1   :  { %10 = vsyncpa [#allocation5], 0  ;;  %s19_s14 = sshll.u32 %s255_s2, 4  ;;  %s205_s15 = smov [#allocation3]   ;;  %s20_s14 = int_to_ptr.hbm [resolvable:$true] %s19_s14 }
   0x2   :  { %s21_s16 = sshll.u32 %s205_s15, 4  ;;  %s206_s17 = smov 128   ;;  %s22_s16 = int_to_ptr.vmem [resolvable:$true] %s21_s16 }
   0x3   :  { %s207_s18 = smov 8  }
   0x4   :  { %27 = dma.hbm_to_vmem [thread:$0]  %s20_s14, 256, %s22_s16, [#allocation4], %s206_s17, %s206_s17, %s207_s18  }
   0x5   :  { %201 = dma.done.wait [#allocation4], 256  }
   0x6   :  { %202 = vsyncadd [#allocation4], 4294967040  ;;  %v208_v0 = vmov 0   ;;  %v34_v1 = vld [vmem:[%s253_s0] sm:$0xf]  ;;  %v32_v6 = vld [vmem:[#allocation3] sm:$0xff]  ;;  %v89_v39 = vstv %s254_s1  ;;  %v117_v48 = vlaneseq }
   0x7   :  { %152 = vset.pattern.permute.xlu0 %v208_v0  ;;  %v209_v2 = vmov 839922192   ;;  %v33_v7 = vld [vmem:[#allocation3 + $0x8] sm:$0xff]  ;;  %vm59_vm0 = vcmask 1043456   ;;  %vm210_vm5 = vmmov 1   ;;  %v211_v50 = vmov nan  }
   0x8   :  { %37 = vperm.xlu0 %152, %v34_v1   ;;  %v40_v3 = vunpack.c.l.s4 %v209_v2  ;;  %vm112_vm9 = vcmask 1040384   ;;  %s212_s1 = smov [#allocation6]   ;;  %s129_s24 = sshll.u32 %s256_s3, 4  ;;  %vm119_vm11 = vcmp.lt.s32.totalorder %v117_v48, 256  ;;  %s130_s24 = int_to_ptr.hbm [resolvable:$true] %s129_s24 }
   0x9   :  { %s127_s21 = sshll.u32 %s212_s1, 4  ;;  %s213_s25 = smov 32   ;;  %s128_s21 = int_to_ptr.vmem [resolvable:$true] %s127_s21 }
   0xa   :  { %v41_v4 = vunpack.c.0.s8 %v40_v3  ;;  %s214_s26 = smov 2  }
  0x7a   :  { %v38_v5 = vpop.permute.xlu0 %37 }
  0x7b   :  { %v42_v8 = vperm.slane %v38_v5, %v41_v4 }
  0x7d   :  { %v44_v9 = vmul.f32 %v42_v8, %v32_v6  ;;  %v45_v10 = vmul.f32 %v42_v8, %v33_v7 }
  0x7f   :  { %48 = vst [vmem:[#allocation1] ss:$2 sm:$0xff] %v44_v9 }
  0x80   :  { %52 = vst [vmem:[#allocation1 + $0x10] ss:$2 sm:$0xff] %v45_v10 }
  0x86   :  { %v49_v11 = vld.sshfl [vmem:[#allocation1] sm:$0xff pattern:$0x75316420]  ;;  %v50_v12 = vld.sshfl [vmem:[#allocation1 + $0x8] sm:$0xff pattern:$0x75316420] }
  0x87   :  { %v53_v13 = vld.sshfl [vmem:[#allocation1 + $0x10] sm:$0xff pattern:$0x75316420]  ;;  %v54_v14 = vld.sshfl [vmem:[#allocation1 + $0x18] sm:$0xff pattern:$0x75316420] }
  0x88   :  { %v60_v15 = vsel %vm59_vm0, %v49_v11, 0.0  ;;  %v67_v16 = vsel %vm59_vm0, %v50_v12, 0.0  ;;  %v74_v17 = vsel %vm59_vm0, %v53_v13, 0.0  ;;  %v81_v18 = vsel %vm59_vm0, %v54_v14, 0.0 }
  0x89   :  { %v61_v19 = vrot.slane %v60_v15, 4  ;;  %v68_v20 = vrot.slane %v67_v16, 4  ;;  %v75_v21 = vrot.slane %v74_v17, 4  ;;  %v82_v22 = vrot.slane %v81_v18, 4 }
  0x8b   :  { %v62_v23 = vadd.f32 %v61_v19, %v60_v15  ;;  %v69_v24 = vadd.f32 %v68_v20, %v67_v16  ;;  %v76_v25 = vadd.f32 %v75_v21, %v74_v17  ;;  %v83_v26 = vadd.f32 %v82_v22, %v81_v18 }
  0x8d   :  { %v63_v27 = vrot.slane %v62_v23, 2  ;;  %v70_v28 = vrot.slane %v69_v24, 2  ;;  %v77_v29 = vrot.slane %v76_v25, 2  ;;  %v84_v30 = vrot.slane %v83_v26, 2 }
  0x8f   :  { %v64_v31 = vadd.f32 %v63_v27, %v62_v23  ;;  %v71_v32 = vadd.f32 %v70_v28, %v69_v24  ;;  %v78_v33 = vadd.f32 %v77_v29, %v76_v25  ;;  %v85_v34 = vadd.f32 %v84_v30, %v83_v26 }
  0x91   :  { %v65_v35 = vrot.slane %v64_v31, 1  ;;  %v72_v36 = vrot.slane %v71_v32, 1  ;;  %v79_v37 = vrot.slane %v78_v33, 1  ;;  %v86_v38 = vrot.slane %v85_v34, 1 }
  0x93   :  { %v66_v40 = vadd.f32 %v65_v35, %v64_v31  ;;  %v73_v41 = vadd.f32 %v72_v36, %v71_v32  ;;  %v80_v42 = vadd.f32 %v79_v37, %v78_v33  ;;  %v87_v43 = vadd.f32 %v86_v38, %v85_v34 }
  0x95   :  { %v90_v44 = vadd.f32 %v89_v39, %v66_v40  ;;  %v91_v45 = vadd.f32 %v89_v39, %v73_v41  ;;  %v92_v46 = vadd.f32 %v89_v39, %v80_v42  ;;  %v93_v47 = vadd.f32 %v89_v39, %v87_v43 }
  0x97   :  { %vm94_vm1 = vweird.f32 %v90_v44  ;;  %vm95_vm2 = vweird.f32 %v91_v45  ;;  %vm96_vm3 = vweird.f32 %v92_v46  ;;  %vm97_vm4 = vweird.f32 %v93_v47 }
  0x98   :  { %vm98_vm6 = vmxor %vm94_vm1, %vm210_vm5 }
  0x99   :  { %vm99_vm7 = vmxor %vm95_vm2, %vm210_vm5  ;;  %v102_v53 = vsel %vm98_vm6, 1.0, %v211_v50 }
  0x9a   :  { %vm244_vm8 = vmxor %vm96_vm3, %vm210_vm5  ;;  %v103_v51 = vsel %vm99_vm7, 1.0, %v211_v50 }
  0x9b   :  { %vm101_vm10 = vmxor %vm97_vm4, %vm210_vm5  ;;  %v110_v52 = vrot.slane %v103_v51, 7  ;;  %v104_v57 = vsel %vm244_vm8, 1.0, %v211_v50 }
  0x9c   :  { %v105_v54 = vsel %vm101_vm10, 1.0, %v211_v50 }
  0x9d   :  { %v111_v55 = vrot.slane %v105_v54, 7  ;;  %v113_v56 = vsel %vm112_vm9, %v102_v53, %v110_v52 }
  0x9e   :  { %121 = vst.msk [vmem:[#allocation6] sm:$0x3] %vm119_vm11, %v113_v56 }
  0x9f   :  { %v114_v58 = vsel %vm112_vm9, %v104_v57, %v111_v55 }
  0xa0   :  { %122 = vst.msk [vmem:[#allocation6 + $0x2] sm:$0x3] %vm119_vm11, %v114_v58 }
  0xa1   :  { %135 = dma.vmem_to_hbm [thread:$0]  %s128_s21, 64, %s130_s24, [#allocation5], %s213_s25, %s213_s25, %s214_s26  }
  0xa2   :  { %203 = dma.done.wait [#allocation5], 64  }
  0xa3   :  { %204 = vsyncadd [#allocation5], 4294967232 }
  0xa4   :  { %140 = vsyncpa [#allocation4], 1 }
  0xa5   :  { %141 = vsyncpa [#allocation5], 1 }

</bundles_post_ra>
